<compile_context>
chip_gen: v5e
topology: v5e:2x2
jax: 0.10.0
libtpu: 0.0.40
codegen_flags: <defaults>
</compile_context>

<pallas_src>
import jax
import jax.numpy as jnp
from jax.experimental import pallas as pl
from jax.experimental.pallas import tpu as pltpu

_LN_EPS = 1e-5    # PyTorch nn.LayerNorm default
_ROW_GRAN = 16    # bf16 packs 2 rows/sublane; keep batch tiles (16,.)-aligned


def _round_up(a, b):
    return (a + b - 1) // b * b


def _tpu_tuning():
    """(tk_max, emb_buffer_count) per TPU generation.

    v5e/v6e have 128 MiB VMEM -> bigger K chunks and deeper embedding-stream
    buffering to hide the HBM stream; v7x (64 MiB) and unknown chips stay
    conservative."""
    try:
        kind = jax.devices()[0].device_kind.lower()
    except Exception:
        kind = ""
    if "v5 lite" in kind or "v5e" in kind or "v6" in kind:
        return 1024, 3
    return 512, 2


# ----------------------------------------------------------------------------
# Kernel
# ----------------------------------------------------------------------------
def sparse_context_kernel(x_ref, e_ref, gamma_ref, beta_ref, w1_ref, b1_ref,
                          w2_ref, b2_ref, out_ref):
    k = pl.program_id(1)
    last_k = pl.num_programs(1) - 1

    # Embedding matmul streamed over the K (num_embeddings) grid axis; the
    # partial sums accumulate directly in the resident f32 output block
    # (out_specs index_map ignores k, so the block stays in VMEM across k).
    part = jnp.dot(x_ref[...], e_ref[...], preferred_element_type=jnp.float32)

    @pl.when(k == 0)
    def _():
        out_ref[...] = part

    @pl.when(k != 0)
    def _():
        out_ref[...] += part

    @pl.when(k == last_k)
    def _():
        h = out_ref[...]                                     # (tm, D) f32

        # LayerNorm over the feature dim (biased variance, eps=1e-5, affine).
        mu = jnp.mean(h, axis=-1, keepdims=True)
        c = h - mu
        var = jnp.mean(c * c, axis=-1, keepdims=True)
        hn = c * jax.lax.rsqrt(var + _LN_EPS)
        hn = hn * gamma_ref[...] + beta_ref[...]

        # Linear(D,D) -> ReLU -> (Dropout: identity in eval) -> Linear(D,D).
        # bf16 operands on the MXU, f32 accumulation / bias adds.
        p = jnp.dot(hn.astype(w1_ref.dtype), w1_ref[...],
                    preferred_element_type=jnp.float32)
        p = jnp.maximum(p + b1_ref[...], 0.0)
        # TODO(synk): training-mode Dropout(p=0.5) mask would go here.
        o = jnp.dot(p.astype(w2_ref.dtype), w2_ref[...],
                    preferred_element_type=jnp.float32)
        out_ref[...] = o + b2_ref[...]


# ----------------------------------------------------------------------------
# Parameter preparation (one-time, at load time — NOT per forward call)
# ----------------------------------------------------------------------------
def prepare_params(params, *, tk_max=None, compute_dtype=jnp.bfloat16):
    """Cast matmul operands (emb, W1, W2) to bf16 and pad the embedding table
    rows to a multiple of the K tile ONCE, so the forward pass never re-copies
    the K x D table in HBM."""
    emb, gamma, beta, w1, b1, w2, b2 = params
    K, D = emb.shape
    auto_tk, emb_buffers = _tpu_tuning()
    if tk_max is None:
        tk_max = auto_tk

    if K <= tk_max:
        tk, k_pad = K, K                       # single K step, no padding at all
    else:
        tk = _round_up(min(tk_max, K), 128)    # lane-aligned K chunks
        k_pad = _round_up(K, tk)

    emb = jnp.asarray(emb, compute_dtype)
    if k_pad != K:
        emb = jnp.pad(emb, ((0, k_pad - K), (0, 0)))

    as_row = lambda v: jnp.asarray(v, jnp.float32).reshape(1, D)
    return dict(
        emb=emb,
        gamma=as_row(gamma), beta=as_row(beta),
        w1=jnp.asarray(w1, compute_dtype), b1=as_row(b1),
        w2=jnp.asarray(w2, compute_dtype), b2=as_row(b2),
        K=K, k_pad=k_pad, tk=tk, D=D,
        emb_buffers=emb_buffers, compute_dtype=compute_dtype)


# ----------------------------------------------------------------------------
# pallas_call builder + forward wrapper
# ----------------------------------------------------------------------------
def _build_pallas_call(*, tm, tk, D, grid, n_pad, emb_buffers, vmem_limit,
                       use_pipeline_mode):
    def const_spec(shape):
        # Parameter blocks whose block index never changes: single-buffer them
        # so they don't waste a second VMEM copy (most binding on v7x's 64 MiB).
        if use_pipeline_mode:
            return pl.BlockSpec(shape, lambda i, k: (0, 0),
                                pipeline_mode=pl.Buffered(1))
        return pl.BlockSpec(shape, lambda i, k: (0, 0))

    if use_pipeline_mode and emb_buffers != 2:
        emb_spec = pl.BlockSpec((tk, D), lambda i, k: (k, 0),
                                pipeline_mode=pl.Buffered(emb_buffers))
    else:
        emb_spec = pl.BlockSpec((tk, D), lambda i, k: (k, 0))

    return pl.pallas_call(
        sparse_context_kernel,
        out_shape=jax.ShapeDtypeStruct((n_pad, D), jnp.float32),
        grid_spec=pltpu.PrefetchScalarGridSpec(
            num_scalar_prefetch=0,
            grid=grid,
            in_specs=[
                pl.BlockSpec((tm, tk), lambda i, k: (i, k)),   # x tile (bf16)
                emb_spec,                                      # emb tile (bf16)
                const_spec((1, D)),                            # LN gamma
                const_spec((1, D)),                            # LN beta
                const_spec((D, D)),                            # W1 (in, out)
                const_spec((1, D)),                            # b1
                const_spec((D, D)),                            # W2 (in, out)
                const_spec((1, D)),                            # b2
            ],
            out_specs=pl.BlockSpec((tm, D), lambda i, k: (i, 0)),
        ),
        compiler_params=pltpu.CompilerParams(
            dimension_semantics=("parallel", "arbitrary"),
            vmem_limit_bytes=vmem_limit),
    )


def sparse_context_forward(x, prepared, *, tm_max=512):
    """x: (N, num_embeddings) -> (N, embedding_dim).
    `prepared` comes from prepare_params (one-time bf16 cast + K-tile padding)."""
    D, K = prepared["D"], prepared["K"]
    k_pad, tk = prepared["k_pad"], prepared["tk"]
    N, K_x = x.shape
    assert K_x == K, "x feature dim must equal num_embeddings"

    x = x.astype(prepared["compute_dtype"])

    # Batch tiling: large tiles, but keep >= 2 batch tiles whenever N allows so
    # the "parallel" axis can be sharded over both v7x TensorCores (a harmless
    # sequential loop on single-TC v5e/v6e).
    n_r = _round_up(N, _ROW_GRAN)
    if n_r >= 2 * _ROW_GRAN:
        tm = min(tm_max, _round_up((n_r + 1) // 2, _ROW_GRAN))
    else:
        tm = n_r
    n_pad = _round_up(N, tm)

    # Only the small activation tensor is padded per call (N tail, plus the K
    # tail when tk does not divide K); the K x D table itself was padded once
    # in prepare_params — no per-call HBM copy of the table.
    if n_pad != N or k_pad != K:
        x = jnp.pad(x, ((0, n_pad - N), (0, k_pad - K)))

    grid = (n_pad // tm, k_pad // tk)
    n_k_steps = grid[1]
    emb_buffers = prepared["emb_buffers"] if n_k_steps >= prepared["emb_buffers"] else 2

    # Explicit VMEM budget (v5e's scoped default is only 16 MiB): double-buffered
    # x tile + emb stream + resident f32 output block + single-buffered weights,
    # ~50% headroom, clamped to [32 MiB, 64 MiB] so it is legal on every
    # generation (v7x physical VMEM is 64 MiB).
    est = (2 * tm * tk * 2                  # x tiles, double-buffered, bf16
           + emb_buffers * tk * D * 2       # emb stream
           + 2 * tm * D * 4                 # resident f32 output block
           + 2 * D * D * 2                  # W1 + W2 (single-buffered, bf16)
           + 4 * 8 * 128 * 4)               # gamma/beta/b1/b2 padded tiles
    vmem_limit = int(min(max(32 << 20, est * 3 // 2 + (2 << 20)), 64 << 20))

    args = (x, prepared["emb"], prepared["gamma"], prepared["beta"],
            prepared["w1"], prepared["b1"], prepared["w2"], prepared["b2"])
    kwargs = dict(tm=tm, tk=tk, D=D, grid=grid, n_pad=n_pad,
                  emb_buffers=emb_buffers, vmem_limit=vmem_limit)
    try:
        out = _build_pallas_call(use_pipeline_mode=True, **kwargs)(*args)
    except Exception:
        # Fallback for JAX builds where BlockSpec(pipeline_mode=pl.Buffered(n))
        # is not supported by the TPU pipeline: identical kernel, default
        # double-buffering everywhere.
        out = _build_pallas_call(use_pipeline_mode=False, **kwargs)(*args)
    return out[:N]


# ----------------------------------------------------------------------------
# Init + pure-JAX reference
# ----------------------------------------------------------------------------
def init_params(key, embedding_dim, num_embeddings):
    D, K = embedding_dim, num_embeddings
    ks = jax.random.split(key, 7)
    # xavier-normal-ish embedding; Linear weights stored (in, out).
    emb = jax.random.normal(ks[0], (K, D), jnp.float32) * (2.0 / (K + D)) ** 0.5
    gamma = 1.0 + 0.1 * jax.random.normal(ks[1], (D,), jnp.float32)
    beta = 0.1 * jax.random.normal(ks[2], (D,), jnp.float32)
    w1 = jax.random.normal(ks[3], (D, D), jnp.float32) * 0.1
    b1 = jax.random.normal(ks[4], (D,), jnp.float32) * 0.1
    w2 = jax.random.normal(ks[5], (D, D), jnp.float32) * 0.1
    b2 = jax.random.normal(ks[6], (D,), jnp.float32) * 0.1
    return (emb, gamma, beta, w1, b1, w2, b2)


def sparse_context_reference(x, params, *, compute_dtype=jnp.float32):
    """Pure-JAX reference (eval mode).  compute_dtype mirrors the kernel's bf16
    operand rounding so the comparison tolerance can stay tight."""
    emb, gamma, beta, w1, b1, w2, b2 = params
    q = lambda a: jnp.asarray(a).astype(compute_dtype).astype(jnp.float32)
    h = q(x) @ q(emb)
    mu = jnp.mean(h, axis=-1, keepdims=True)
    var = jnp.mean((h - mu) ** 2, axis=-1, keepdims=True)
    hn = (h - mu) / jnp.sqrt(var + _LN_EPS)
    hn = hn * gamma.reshape(1, -1) + beta.reshape(1, -1)
    p = jnp.maximum(q(hn) @ q(w1) + b1.reshape(1, -1), 0.0)
    return q(p) @ q(w2) + b2.reshape(1, -1)


# ----------------------------------------------------------------------------
# Self-test
# ----------------------------------------------------------------------------
if __name__ == "__main__":
    key = jax.random.PRNGKey(0)
    k_x1, k_x2, k_p1, k_p2 = jax.random.split(key, 4)

    # Config A: tiny vocab -> single K step (K <= tk), single batch tile.
    N1, K1, D1 = 13, 64, 32
    x1 = jax.random.normal(k_x1, (N1, K1), jnp.float32)
    params1 = init_params(k_p1, D1, K1)
    prep1 = prepare_params(params1)                 # one-time cast (+ padding)
    out1 = jax.block_until_ready(sparse_context_forward(x1, prep1))
    ref1 = sparse_context_reference(x1, params1, compute_dtype=jnp.bfloat16)
    assert out1.shape == (N1, D1)
    assert jnp.allclose(out1, ref1, atol=2e-2, rtol=2e-2), (
        "config A mismatch, max err "
        f"{float(jnp.max(jnp.abs(out1 - ref1)))}")

    # Config B: K > tk -> streamed K reduction accumulating in the resident
    # output block, ragged N and K tails, 2 batch tiles on the parallel axis.
    N2, K2, D2 = 40, 320, 32
    x2 = jax.random.normal(k_x2, (N2, K2), jnp.float32)
    params2 = init_params(k_p2, D2, K2)
    prep2 = prepare_params(params2, tk_max=128)     # force multi-step K at small scale
    out2 = jax.block_until_ready(sparse_context_forward(x2, prep2))
    ref2 = sparse_context_reference(x2, params2, compute_dtype=jnp.bfloat16)
    assert out2.shape == (N2, D2)
    assert jnp.allclose(out2, ref2, atol=2e-2, rtol=2e-2), (
        "config B mismatch, max err "
        f"{float(jnp.max(jnp.abs(out2 - ref2)))}")

    print("KERNEL_OK")
</pallas_src>

<mosaic_0001>
module attributes {stable_mosaic.version = 11 : i64} {
  func.func @sparse_context_kernel(%arg0: i32, %arg1: i32, %arg2: memref<16x64xbf16, #tpu.memory_space<vmem>>, %arg3: memref<64x32xbf16, #tpu.memory_space<vmem>>, %arg4: memref<1x32xf32, #tpu.memory_space<vmem>>, %arg5: memref<1x32xf32, #tpu.memory_space<vmem>>, %arg6: memref<32x32xbf16, #tpu.memory_space<vmem>>, %arg7: memref<1x32xf32, #tpu.memory_space<vmem>>, %arg8: memref<32x32xbf16, #tpu.memory_space<vmem>>, %arg9: memref<1x32xf32, #tpu.memory_space<vmem>>, %arg10: memref<16x32xf32, #tpu.memory_space<vmem>>) attributes {dimension_semantics = [#tpu.dimension_semantics<parallel>, #tpu.dimension_semantics<arbitrary>], iteration_bounds = array<i64: 1, 1>, scalar_prefetch = 0 : i64, scratch_operands = 0 : i64, tpu.core_type = #tpu.core_type<tc>, window_params = [{transform_indices = @transform_0, window_bounds = array<i64: 16, 64>}, {transform_indices = @transform_1, window_bounds = array<i64: 64, 32>}, {pipeline_mode = #tpu.pipeline_mode<synchronous>, transform_indices = @transform_2, window_bounds = array<i64: 1, 32>}, {pipeline_mode = #tpu.pipeline_mode<synchronous>, transform_indices = @transform_3, window_bounds = array<i64: 1, 32>}, {pipeline_mode = #tpu.pipeline_mode<synchronous>, transform_indices = @transform_4, window_bounds = array<i64: 32, 32>}, {pipeline_mode = #tpu.pipeline_mode<synchronous>, transform_indices = @transform_5, window_bounds = array<i64: 1, 32>}, {pipeline_mode = #tpu.pipeline_mode<synchronous>, transform_indices = @transform_6, window_bounds = array<i64: 32, 32>}, {pipeline_mode = #tpu.pipeline_mode<synchronous>, transform_indices = @transform_7, window_bounds = array<i64: 1, 32>}, {transform_indices = @transform_8, window_bounds = array<i64: 16, 32>}]} {
    %c0 = arith.constant 0 : index
    %c0_0 = arith.constant 0 : index
    %0 = vector.load %arg2[%c0, %c0_0] : memref<16x64xbf16, #tpu.memory_space<vmem>>, vector<16x64xbf16>
    %c0_1 = arith.constant 0 : index
    %c0_2 = arith.constant 0 : index
    %1 = vector.load %arg3[%c0_1, %c0_2] : memref<64x32xbf16, #tpu.memory_space<vmem>>, vector<64x32xbf16>
    %cst = arith.constant dense<0.000000e+00> : vector<16x32xf32>
    %2 = tpu.matmul %0, %1, %cst {dimension_numbers = #tpu.dot_dimension_numbers<[1], [0], [0], [1], [0, 0, 1, 1], [], []>} : vector<16x64xbf16>, vector<64x32xbf16>, vector<16x32xf32> -> vector<16x32xf32>
    %c0_i32 = arith.constant 0 : i32
    %3 = arith.cmpi eq, %arg1, %c0_i32 : i32
    %4 = arith.extui %3 : i1 to i32
    %c0_i32_3 = arith.constant 0 : i32
    %5 = arith.cmpi ne, %4, %c0_i32_3 : i32
    scf.if %5 {
      %c0_8 = arith.constant 0 : index
      %c0_9 = arith.constant 0 : index
      %12 = vector.load %arg10[%c0_8, %c0_9] : memref<16x32xf32, #tpu.memory_space<vmem>>, vector<16x32xf32>
      tpu.vector_store %arg10[%c0_8, %c0_9], %2 {strides = array<i32>} : memref<16x32xf32, #tpu.memory_space<vmem>>, vector<16x32xf32>,
    } else {
    }
    %c0_i32_4 = arith.constant 0 : i32
    %6 = arith.cmpi ne, %arg1, %c0_i32_4 : i32
    %7 = arith.extui %6 : i1 to i32
    %c0_i32_5 = arith.constant 0 : i32
    %8 = arith.cmpi ne, %7, %c0_i32_5 : i32
    scf.if %8 {
      %c0_8 = arith.constant 0 : index
      %c0_9 = arith.constant 0 : index
      %12 = vector.load %arg10[%c0_8, %c0_9] : memref<16x32xf32, #tpu.memory_space<vmem>>, vector<16x32xf32>
      %13 = arith.addf %12, %2 : vector<16x32xf32>
      %c0_10 = arith.constant 0 : index
      %c0_11 = arith.constant 0 : index
      %14 = vector.load %arg10[%c0_10, %c0_11] : memref<16x32xf32, #tpu.memory_space<vmem>>, vector<16x32xf32>
      tpu.vector_store %arg10[%c0_10, %c0_11], %13 {strides = array<i32>} : memref<16x32xf32, #tpu.memory_space<vmem>>, vector<16x32xf32>,
    } else {
    }
    %c0_i32_6 = arith.constant 0 : i32
    %9 = arith.cmpi eq, %arg1, %c0_i32_6 : i32
    %10 = arith.extui %9 : i1 to i32
    %c0_i32_7 = arith.constant 0 : i32
    %11 = arith.cmpi ne, %10, %c0_i32_7 : i32
    scf.if %11 {
      %c0_8 = arith.constant 0 : index
      %c0_9 = arith.constant 0 : index
      %12 = vector.load %arg10[%c0_8, %c0_9] : memref<16x32xf32, #tpu.memory_space<vmem>>, vector<16x32xf32>
      %cst_10 = arith.constant dense<0.000000e+00> : vector<16xf32>
      %13 = vector.multi_reduction <add>, %12, %cst_10 [1] : vector<16x32xf32> to vector<16xf32>
      %14 = vector.shape_cast %13 : vector<16xf32> to vector<16x1xf32>
      %cst_11 = arith.constant 3.200000e+01 : f32
      %15 = vector.broadcast %cst_11 : f32 to vector<16x1xf32>
      %16 = arith.divf %14, %15 : vector<16x1xf32>
      %17 = vector.broadcast %16 : vector<16x1xf32> to vector<16x32xf32>
      %18 = arith.subf %12, %17 : vector<16x32xf32>
      %19 = arith.mulf %18, %18 : vector<16x32xf32>
      %cst_12 = arith.constant dense<0.000000e+00> : vector<16xf32>
      %20 = vector.multi_reduction <add>, %19, %cst_12 [1] : vector<16x32xf32> to vector<16xf32>
      %21 = vector.shape_cast %20 : vector<16xf32> to vector<16x1xf32>
      %cst_13 = arith.constant 3.200000e+01 : f32
      %22 = vector.broadcast %cst_13 : f32 to vector<16x1xf32>
      %23 = arith.divf %21, %22 : vector<16x1xf32>
      %cst_14 = arith.constant 9.99999974E-6 : f32
      %24 = vector.broadcast %cst_14 : f32 to vector<16x1xf32>
      %25 = arith.addf %23, %24 : vector<16x1xf32>
      %26 = math.rsqrt %25 : vector<16x1xf32>
      %27 = vector.broadcast %26 : vector<16x1xf32> to vector<16x32xf32>
      %28 = arith.mulf %18, %27 : vector<16x32xf32>
      %c0_15 = arith.constant 0 : index
      %c0_16 = arith.constant 0 : index
      %29 = vector.load %arg4[%c0_15, %c0_16] : memref<1x32xf32, #tpu.memory_space<vmem>>, vector<1x32xf32>
      %30 = vector.broadcast %29 : vector<1x32xf32> to vector<16x32xf32>
      %31 = arith.mulf %28, %30 : vector<16x32xf32>
      %c0_17 = arith.constant 0 : index
      %c0_18 = arith.constant 0 : index
      %32 = vector.load %arg5[%c0_17, %c0_18] : memref<1x32xf32, #tpu.memory_space<vmem>>, vector<1x32xf32>
      %33 = vector.broadcast %32 : vector<1x32xf32> to vector<16x32xf32>
      %34 = arith.addf %31, %33 : vector<16x32xf32>
      %35 = arith.truncf %34 : vector<16x32xf32> to vector<16x32xbf16>
      %c0_19 = arith.constant 0 : index
      %c0_20 = arith.constant 0 : index
      %36 = vector.load %arg6[%c0_19, %c0_20] : memref<32x32xbf16, #tpu.memory_space<vmem>>, vector<32x32xbf16>
      %cst_21 = arith.constant dense<0.000000e+00> : vector<16x32xf32>
      %37 = tpu.matmul %35, %36, %cst_21 {dimension_numbers = #tpu.dot_dimension_numbers<[1], [0], [0], [1], [0, 0, 1, 1], [], []>} : vector<16x32xbf16>, vector<32x32xbf16>, vector<16x32xf32> -> vector<16x32xf32>
      %c0_22 = arith.constant 0 : index
      %c0_23 = arith.constant 0 : index
      %38 = vector.load %arg7[%c0_22, %c0_23] : memref<1x32xf32, #tpu.memory_space<vmem>>, vector<1x32xf32>
      %39 = vector.broadcast %38 : vector<1x32xf32> to vector<16x32xf32>
      %40 = arith.addf %37, %39 : vector<16x32xf32>
      %cst_24 = arith.constant 0.000000e+00 : f32
      %41 = vector.broadcast %cst_24 : f32 to vector<16x32xf32>
      %42 = arith.maximumf %40, %41 : vector<16x32xf32>
      %43 = arith.truncf %42 : vector<16x32xf32> to vector<16x32xbf16>
      %c0_25 = arith.constant 0 : index
      %c0_26 = arith.constant 0 : index
      %44 = vector.load %arg8[%c0_25, %c0_26] : memref<32x32xbf16, #tpu.memory_space<vmem>>, vector<32x32xbf16>
      %cst_27 = arith.constant dense<0.000000e+00> : vector<16x32xf32>
      %45 = tpu.matmul %43, %44, %cst_27 {dimension_numbers = #tpu.dot_dimension_numbers<[1], [0], [0], [1], [0, 0, 1, 1], [], []>} : vector<16x32xbf16>, vector<32x32xbf16>, vector<16x32xf32> -> vector<16x32xf32>
      %c0_28 = arith.constant 0 : index
      %c0_29 = arith.constant 0 : index
      %46 = vector.load %arg9[%c0_28, %c0_29] : memref<1x32xf32, #tpu.memory_space<vmem>>, vector<1x32xf32>
      %47 = vector.broadcast %46 : vector<1x32xf32> to vector<16x32xf32>
      %48 = arith.addf %45, %47 : vector<16x32xf32>
      %c0_30 = arith.constant 0 : index
      %c0_31 = arith.constant 0 : index
      %49 = vector.load %arg10[%c0_30, %c0_31] : memref<16x32xf32, #tpu.memory_space<vmem>>, vector<16x32xf32>
      tpu.vector_store %arg10[%c0_30, %c0_31], %48 {strides = array<i32>} : memref<16x32xf32, #tpu.memory_space<vmem>>, vector<16x32xf32>,
    } else {
    }
    return
  }
  func.func @transform_0(%arg0: i32, %arg1: i32) -> (i32, i32) {
    %c0_i32 = arith.constant 0 : i32
    return %arg0, %arg1 : i32, i32
  }
  func.func @transform_1(%arg0: i32, %arg1: i32) -> (i32, i32) {
    %c0_i32 = arith.constant 0 : i32
    %c0_i32_0 = arith.constant 0 : i32
    return %arg1, %c0_i32 : i32, i32
  }
  func.func @transform_2(%arg0: i32, %arg1: i32) -> (i32, i32) {
    %c0_i32 = arith.constant 0 : i32
    %c0_i32_0 = arith.constant 0 : i32
    %c0_i32_1 = arith.constant 0 : i32
    return %c0_i32, %c0_i32_0 : i32, i32
  }
  func.func @transform_3(%arg0: i32, %arg1: i32) -> (i32, i32) {
    %c0_i32 = arith.constant 0 : i32
    %c0_i32_0 = arith.constant 0 : i32
    %c0_i32_1 = arith.constant 0 : i32
    return %c0_i32, %c0_i32_0 : i32, i32
  }
  func.func @transform_4(%arg0: i32, %arg1: i32) -> (i32, i32) {
    %c0_i32 = arith.constant 0 : i32
    %c0_i32_0 = arith.constant 0 : i32
    %c0_i32_1 = arith.constant 0 : i32
    return %c0_i32, %c0_i32_0 : i32, i32
  }
  func.func @transform_5(%arg0: i32, %arg1: i32) -> (i32, i32) {
    %c0_i32 = arith.constant 0 : i32
    %c0_i32_0 = arith.constant 0 : i32
    %c0_i32_1 = arith.constant 0 : i32
    return %c0_i32, %c0_i32_0 : i32, i32
  }
  func.func @transform_6(%arg0: i32, %arg1: i32) -> (i32, i32) {
    %c0_i32 = arith.constant 0 : i32
    %c0_i32_0 = arith.constant 0 : i32
    %c0_i32_1 = arith.constant 0 : i32
    return %c0_i32, %c0_i32_0 : i32, i32
  }
  func.func @transform_7(%arg0: i32, %arg1: i32) -> (i32, i32) {
    %c0_i32 = arith.constant 0 : i32
    %c0_i32_0 = arith.constant 0 : i32
    %c0_i32_1 = arith.constant 0 : i32
    return %c0_i32, %c0_i32_0 : i32, i32
  }
  func.func @transform_8(%arg0: i32, %arg1: i32) -> (i32, i32) {
    %c0_i32 = arith.constant 0 : i32
    %c0_i32_0 = arith.constant 0 : i32
    return %arg0, %c0_i32 : i32, i32
  }
}

module attributes {stable_mosaic.version = 11 : i64} {
  func.func @sparse_context_kernel(%arg0: i32, %arg1: i32, %arg2: memref<16x64xbf16, #tpu.memory_space<vmem>>, %arg3: memref<64x32xbf16, #tpu.memory_space<vmem>>, %arg4: memref<1x32xf32, #tpu.memory_space<vmem>>, %arg5: memref<1x32xf32, #tpu.memory_space<vmem>>, %arg6: memref<32x32xbf16, #tpu.memory_space<vmem>>, %arg7: memref<1x32xf32, #tpu.memory_space<vmem>>, %arg8: memref<32x32xbf16, #tpu.memory_space<vmem>>, %arg9: memref<1x32xf32, #tpu.memory_space<vmem>>, %arg10: memref<16x32xf32, #tpu.memory_space<vmem>>) attributes {dimension_semantics = [#tpu.dimension_semantics<parallel>, #tpu.dimension_semantics<arbitrary>], iteration_bounds = array<i64: 1, 1>, scalar_prefetch = 0 : i64, scratch_operands = 0 : i64, tpu.core_type = #tpu.core_type<tc>, window_params = [{transform_indices = @transform_0, window_bounds = array<i64: 16, 64>}, {transform_indices = @transform_1, window_bounds = array<i64: 64, 32>}, {pipeline_mode = #tpu.pipeline_mode<synchronous>, transform_indices = @transform_2, window_bounds = array<i64: 1, 32>}, {pipeline_mode = #tpu.pipeline_mode<synchronous>, transform_indices = @transform_3, window_bounds = array<i64: 1, 32>}, {pipeline_mode = #tpu.pipeline_mode<synchronous>, transform_indices = @transform_4, window_bounds = array<i64: 32, 32>}, {pipeline_mode = #tpu.pipeline_mode<synchronous>, transform_indices = @transform_5, window_bounds = array<i64: 1, 32>}, {pipeline_mode = #tpu.pipeline_mode<synchronous>, transform_indices = @transform_6, window_bounds = array<i64: 32, 32>}, {pipeline_mode = #tpu.pipeline_mode<synchronous>, transform_indices = @transform_7, window_bounds = array<i64: 1, 32>}, {transform_indices = @transform_8, window_bounds = array<i64: 16, 32>}]} {
    %c0 = arith.constant 0 : index
    %c0_0 = arith.constant 0 : index
    %0 = vector.load %arg2[%c0, %c0_0] : memref<16x64xbf16, #tpu.memory_space<vmem>>, vector<16x64xbf16>
    %c0_1 = arith.constant 0 : index
    %c0_2 = arith.constant 0 : index
    %1 = vector.load %arg3[%c0_1, %c0_2] : memref<64x32xbf16, #tpu.memory_space<vmem>>, vector<64x32xbf16>
    %cst = arith.constant dense<0.000000e+00> : vector<16x32xf32>
    %2 = tpu.matmul %0, %1, %cst {dimension_numbers = #tpu.dot_dimension_numbers<[1], [0], [0], [1], [0, 0, 1, 1], [], []>} : vector<16x64xbf16>, vector<64x32xbf16>, vector<16x32xf32> -> vector<16x32xf32>
    %c0_i32 = arith.constant 0 : i32
    %3 = arith.cmpi eq, %arg1, %c0_i32 : i32
    %4 = arith.extui %3 : i1 to i32
    %c0_i32_3 = arith.constant 0 : i32
    %5 = arith.cmpi ne, %4, %c0_i32_3 : i32
    scf.if %5 {
      %c0_8 = arith.constant 0 : index
      %c0_9 = arith.constant 0 : index
      %12 = vector.load %arg10[%c0_8, %c0_9] : memref<16x32xf32, #tpu.memory_space<vmem>>, vector<16x32xf32>
      tpu.vector_store %arg10[%c0_8, %c0_9], %2 {strides = array<i32>} : memref<16x32xf32, #tpu.memory_space<vmem>>, vector<16x32xf32>,
    } else {
    }
    %c0_i32_4 = arith.constant 0 : i32
    %6 = arith.cmpi ne, %arg1, %c0_i32_4 : i32
    %7 = arith.extui %6 : i1 to i32
    %c0_i32_5 = arith.constant 0 : i32
    %8 = arith.cmpi ne, %7, %c0_i32_5 : i32
    scf.if %8 {
      %c0_8 = arith.constant 0 : index
      %c0_9 = arith.constant 0 : index
      %12 = vector.load %arg10[%c0_8, %c0_9] : memref<16x32xf32, #tpu.memory_space<vmem>>, vector<16x32xf32>
      %13 = arith.addf %12, %2 : vector<16x32xf32>
      %c0_10 = arith.constant 0 : index
      %c0_11 = arith.constant 0 : index
      %14 = vector.load %arg10[%c0_10, %c0_11] : memref<16x32xf32, #tpu.memory_space<vmem>>, vector<16x32xf32>
      tpu.vector_store %arg10[%c0_10, %c0_11], %13 {strides = array<i32>} : memref<16x32xf32, #tpu.memory_space<vmem>>, vector<16x32xf32>,
    } else {
    }
    %c0_i32_6 = arith.constant 0 : i32
    %9 = arith.cmpi eq, %arg1, %c0_i32_6 : i32
    %10 = arith.extui %9 : i1 to i32
    %c0_i32_7 = arith.constant 0 : i32
    %11 = arith.cmpi ne, %10, %c0_i32_7 : i32
    scf.if %11 {
      %c0_8 = arith.constant 0 : index
      %c0_9 = arith.constant 0 : index
      %12 = vector.load %arg10[%c0_8, %c0_9] : memref<16x32xf32, #tpu.memory_space<vmem>>, vector<16x32xf32>
      %cst_10 = arith.constant dense<0.000000e+00> : vector<16xf32>
      %13 = vector.multi_reduction <add>, %12, %cst_10 [1] : vector<16x32xf32> to vector<16xf32>
      %14 = vector.shape_cast %13 : vector<16xf32> to vector<16x1xf32>
      %cst_11 = arith.constant 3.200000e+01 : f32
      %15 = vector.broadcast %cst_11 : f32 to vector<16x1xf32>
      %16 = arith.divf %14, %15 : vector<16x1xf32>
      %17 = vector.broadcast %16 : vector<16x1xf32> to vector<16x32xf32>
      %18 = arith.subf %12, %17 : vector<16x32xf32>
      %19 = arith.mulf %18, %18 : vector<16x32xf32>
      %cst_12 = arith.constant dense<0.000000e+00> : vector<16xf32>
      %20 = vector.multi_reduction <add>, %19, %cst_12 [1] : vector<16x32xf32> to vector<16xf32>
      %21 = vector.shape_cast %20 : vector<16xf32> to vector<16x1xf32>
      %cst_13 = arith.constant 3.200000e+01 : f32
      %22 = vector.broadcast %cst_13 : f32 to vector<16x1xf32>
      %23 = arith.divf %21, %22 : vector<16x1xf32>
      %cst_14 = arith.constant 9.99999974E-6 : f32
      %24 = vector.broadcast %cst_14 : f32 to vector<16x1xf32>
      %25 = arith.addf %23, %24 : vector<16x1xf32>
      %26 = math.rsqrt %25 : vector<16x1xf32>
      %27 = vector.broadcast %26 : vector<16x1xf32> to vector<16x32xf32>
      %28 = arith.mulf %18, %27 : vector<16x32xf32>
      %c0_15 = arith.constant 0 : index
      %c0_16 = arith.constant 0 : index
      %29 = vector.load %arg4[%c0_15, %c0_16] : memref<1x32xf32, #tpu.memory_space<vmem>>, vector<1x32xf32>
      %30 = vector.broadcast %29 : vector<1x32xf32> to vector<16x32xf32>
      %31 = arith.mulf %28, %30 : vector<16x32xf32>
      %c0_17 = arith.constant 0 : index
      %c0_18 = arith.constant 0 : index
      %32 = vector.load %arg5[%c0_17, %c0_18] : memref<1x32xf32, #tpu.memory_space<vmem>>, vector<1x32xf32>
      %33 = vector.broadcast %32 : vector<1x32xf32> to vector<16x32xf32>
      %34 = arith.addf %31, %33 : vector<16x32xf32>
      %35 = arith.truncf %34 : vector<16x32xf32> to vector<16x32xbf16>
      %c0_19 = arith.constant 0 : index
      %c0_20 = arith.constant 0 : index
      %36 = vector.load %arg6[%c0_19, %c0_20] : memref<32x32xbf16, #tpu.memory_space<vmem>>, vector<32x32xbf16>
      %cst_21 = arith.constant dense<0.000000e+00> : vector<16x32xf32>
      %37 = tpu.matmul %35, %36, %cst_21 {dimension_numbers = #tpu.dot_dimension_numbers<[1], [0], [0], [1], [0, 0, 1, 1], [], []>} : vector<16x32xbf16>, vector<32x32xbf16>, vector<16x32xf32> -> vector<16x32xf32>
      %c0_22 = arith.constant 0 : index
      %c0_23 = arith.constant 0 : index
      %38 = vector.load %arg7[%c0_22, %c0_23] : memref<1x32xf32, #tpu.memory_space<vmem>>, vector<1x32xf32>
      %39 = vector.broadcast %38 : vector<1x32xf32> to vector<16x32xf32>
      %40 = arith.addf %37, %39 : vector<16x32xf32>
      %cst_24 = arith.constant 0.000000e+00 : f32
      %41 = vector.broadcast %cst_24 : f32 to vector<16x32xf32>
      %42 = arith.maximumf %40, %41 : vector<16x32xf32>
      %43 = arith.truncf %42 : vector<16x32xf32> to vector<16x32xbf16>
      %c0_25 = arith.constant 0 : index
      %c0_26 = arith.constant 0 : index
      %44 = vector.load %arg8[%c0_25, %c0_26] : memref<32x32xbf16, #tpu.memory_space<vmem>>, vector<32x32xbf16>
      %cst_27 = arith.constant dense<0.000000e+00> : vector<16x32xf32>
      %45 = tpu.matmul %43, %44, %cst_27 {dimension_numbers = #tpu.dot_dimension_numbers<[1], [0], [0], [1], [0, 0, 1, 1], [], []>} : vector<16x32xbf16>, vector<32x32xbf16>, vector<16x32xf32> -> vector<16x32xf32>
      %c0_28 = arith.constant 0 : index
      %c0_29 = arith.constant 0 : index
      %46 = vector.load %arg9[%c0_28, %c0_29] : memref<1x32xf32, #tpu.memory_space<vmem>>, vector<1x32xf32>
      %47 = vector.broadcast %46 : vector<1x32xf32> to vector<16x32xf32>
      %48 = arith.addf %45, %47 : vector<16x32xf32>
      %c0_30 = arith.constant 0 : index
      %c0_31 = arith.constant 0 : index
      %49 = vector.load %arg10[%c0_30, %c0_31] : memref<16x32xf32, #tpu.memory_space<vmem>>, vector<16x32xf32>
      tpu.vector_store %arg10[%c0_30, %c0_31], %48 {strides = array<i32>} : memref<16x32xf32, #tpu.memory_space<vmem>>, vector<16x32xf32>,
    } else {
    }
    return
  }
  func.func @transform_0(%arg0: i32, %arg1: i32) -> (i32, i32) {
    %c0_i32 = arith.constant 0 : i32
    return %arg0, %arg1 : i32, i32
  }
  func.func @transform_1(%arg0: i32, %arg1: i32) -> (i32, i32) {
    %c0_i32 = arith.constant 0 : i32
    %c0_i32_0 = arith.constant 0 : i32
    return %arg1, %c0_i32 : i32, i32
  }
  func.func @transform_2(%arg0: i32, %arg1: i32) -> (i32, i32) {
    %c0_i32 = arith.constant 0 : i32
    %c0_i32_0 = arith.constant 0 : i32
    %c0_i32_1 = arith.constant 0 : i32
    return %c0_i32, %c0_i32_0 : i32, i32
  }
  func.func @transform_3(%arg0: i32, %arg1: i32) -> (i32, i32) {
    %c0_i32 = arith.constant 0 : i32
    %c0_i32_0 = arith.constant 0 : i32
    %c0_i32_1 = arith.constant 0 : i32
    return %c0_i32, %c0_i32_0 : i32, i32
  }
  func.func @transform_4(%arg0: i32, %arg1: i32) -> (i32, i32) {
    %c0_i32 = arith.constant 0 : i32
    %c0_i32_0 = arith.constant 0 : i32
    %c0_i32_1 = arith.constant 0 : i32
    return %c0_i32, %c0_i32_0 : i32, i32
  }
  func.func @transform_5(%arg0: i32, %arg1: i32) -> (i32, i32) {
    %c0_i32 = arith.constant 0 : i32
    %c0_i32_0 = arith.constant 0 : i32
    %c0_i32_1 = arith.constant 0 : i32
    return %c0_i32, %c0_i32_0 : i32, i32
  }
  func.func @transform_6(%arg0: i32, %arg1: i32) -> (i32, i32) {
    %c0_i32 = arith.constant 0 : i32
    %c0_i32_0 = arith.constant 0 : i32
    %c0_i32_1 = arith.constant 0 : i32
    return %c0_i32, %c0_i32_0 : i32, i32
  }
  func.func @transform_7(%arg0: i32, %arg1: i32) -> (i32, i32) {
    %c0_i32 = arith.constant 0 : i32
    %c0_i32_0 = arith.constant 0 : i32
    %c0_i32_1 = arith.constant 0 : i32
    return %c0_i32, %c0_i32_0 : i32, i32
  }
  func.func @transform_8(%arg0: i32, %arg1: i32) -> (i32, i32) {
    %c0_i32 = arith.constant 0 : i32
    %c0_i32_0 = arith.constant 0 : i32
    return %arg0, %c0_i32 : i32, i32
  }
}

</mosaic_0001>

<bundles_post_ra>
// kernel: tpu_custom_call.1
= control target key start
LH: loop header
LB: loop body
LE: loop exit
PB: predicated region body
PF: predicated region fallthrough
CT: control target
= control target key end

     0   :  { %s462_s0 = inlined_call_operand.vmem [shape: bf16[16,64], index: 0, kind: input, shape index: {}]   ;;  %s463_s1 = inlined_call_operand.vmem [shape: bf16[64,32], index: 1, kind: input, shape index: {}]   ;;  %s464_s2 = inlined_call_operand.vmem [shape: f32[1,32], index: 2, kind: input, shape index: {}]   ;;  %s465_s3 = inlined_call_operand.vmem [shape: f32[1,32], index: 3, kind: input, shape index: {}]   ;;  %s466_s4 = inlined_call_operand.vmem [shape: bf16[32,32], index: 4, kind: input, shape index: {}]   ;;  %s467_s5 = inlined_call_operand.vmem [shape: f32[1,32], index: 5, kind: input, shape index: {}]   ;;  %s468_s6 = inlined_call_operand.vmem [shape: bf16[32,32], index: 6, kind: input, shape index: {}]   ;;  %s469_s7 = inlined_call_operand.vmem [shape: f32[1,32], index: 7, kind: input, shape index: {}]   ;;  %s470_s8 = inlined_call_operand.hbm [shape: f32[16,32], index: 8, kind: output, shape index: {}]  }
   0x1   :  { %v316_v0 = vld [vmem:[%s463_s1 + $0x18] sm:$0xff]  ;;  %v315_v1 = vld [vmem:[%s463_s1 + $0x10] sm:$0xff] }
   0x2   :  { %78 = vmatpush.bf16.msra.mxu0 %v316_v0 }
   0x3   :  { %13 = vsyncpa [#allocation3], 0  ;;  %v314_v2 = vld [vmem:[%s463_s1 + $0x8] sm:$0xff]  ;;  %v313_v3 = vld [vmem:[%s463_s1] sm:$0xff]  ;;  %vm70_vm0 = vcmask 523264   ;;  %vm92_vm1 = vcmask 261120  }
   0x4   :  { %v312_v4 = vld [vmem:[%s462_s0] sm:$0xff]  ;;  %v361_v11 = vmov 32.0   ;;  %v318_v28 = vld [vmem:[%s466_s4 + $0x8] sm:$0xff]  ;;  %s261_s28 = sshll.u32 %s470_s8, 4  ;;  %s363_s29 = smov 128   ;;  %s262_s28 = int_to_ptr.hbm [resolvable:$true] %s261_s28 }
   0x5   :  { %329 = vrcp.f32 %v361_v11  ;;  %205 = vmatpush.bf16.msra.mxu1 %v318_v28  ;;  %v317_v30 = vld [vmem:[%s466_s4] sm:$0xff]  ;;  %v320_v59 = vld [vmem:[%s468_s6 + $0x8] sm:$0xff]  ;;  %s364_s30 = smov 8  }
   0x6   :  { %79 = vmatpush.bf16.msra.mxu0 %v315_v1  ;;  %v325_v49 = vld [vmem:[%s464_s2] ss:$0 sm:$0xff]  ;;  %245 = vmatpush.bf16.msra.mxu2 %v320_v59 }
   0x7   :  { %v326_v54 = vld [vmem:[%s465_s3] ss:$0 sm:$0xff] }
   0x8   :  { %v319_v60 = vld [vmem:[%s468_s6] sm:$0xff]  ;;  %s362_s6 = smov [#allocation2]  }
   0x9   :  { %206 = vmatpush.bf16.msra.mxu1 %v317_v30  ;;  %v327_v62 = vld [vmem:[%s467_s5] ss:$0 sm:$0xff]  ;;  %s259_s26 = sshll.u32 %s362_s6, 4  ;;  %s260_s26 = int_to_ptr.vmem [resolvable:$true] %s259_s26 }
   0xa   :  { %80 = vmatpush.bf16.msra.mxu0 %v314_v2  ;;  %246 = vmatpush.bf16.msra.mxu2 %v319_v60 }
   0xb   :  { %v330_v12 = vpop.eup %329 }
   0xc   :  { %v119_v13 = vmul.f32 32.0, %v330_v12  ;;  %vm123_vm2 = vweird.f32 %v330_v12 }
   0xe   :  { %81 = vmatpush.bf16.msra.mxu0 %v313_v3  ;;  %v120_v14 = vsub.f32 1.0, %v119_v13 }
  0x10   :  { %v121_v15 = vmul.f32 %v330_v12, %v120_v14 }
  0x11   :  { %293 = vmatmul.msk.bf16.vlgmr.msra.gmra.mxu0 %vm70_vm0, %v312_v4 }
  0x12   :  { %v122_v16 = vadd.f32 %v330_v12, %v121_v15 }
  0x14   :  { %v124_v17 = vsel %vm123_vm2, %v330_v12, %v122_v16 }
  0x8e   :  { %v83_v5 = vpop.f32.mrf.mxu0 }
  0x8f   :  { %93 = vst.msk [vmem:[#allocation2] sm:$0xff] %vm92_vm1, %v83_v5  ;;  %v328_v5 = vld [vmem:[%s469_s7] ss:$0 sm:$0xff] }
  0x96   :  { %v85_v6 = vpop.f32.mrf.mxu0  ;;  %v109_v7 = vld [vmem:[#allocation2] sm:$0xff] }
  0x97   :  { %94 = vst.msk [vmem:[#allocation2 + $0x8] sm:$0xff] %vm92_vm1, %v85_v6  ;;  %v112_v8 = vsel %vm92_vm1, %v109_v7, 0.0 }
  0x98   :  { %113 = vadd.xlane.f32.xlu0 %v112_v8 }
  0x9e   :  { %v110_v9 = vld [vmem:[#allocation2 + $0x8] sm:$0xff] }
  0x9f   :  { %v115_v10 = vsel %vm92_vm1, %v110_v9, 0.0 }
  0xa0   :  { %116 = vadd.xlane.f32.xlu0 %v115_v10 }
 0x10b   :  { %v114_v18 = vpop.xlane.xlu0 %113 }
 0x10c   :  { %v125_v19 = vmul.f32 %v124_v17, %v114_v18 }
 0x10e   :  { %v127_v20 = vsub.f32 %v109_v7, %v125_v19 }
 0x110   :  { %v129_v21 = vmul.f32 %v127_v20, %v127_v20 }
 0x112   :  { %v131_v22 = vsel %vm92_vm1, %v129_v21, 0.0 }
 0x113   :  { %132 = vadd.xlane.f32.xlu1 %v131_v22  ;;  %v117_v23 = vpop.xlane.xlu0 %116 }
 0x114   :  { %v126_v24 = vmul.f32 %v124_v17, %v117_v23 }
 0x116   :  { %v128_v25 = vsub.f32 %v110_v9, %v126_v24 }
 0x118   :  { %v130_v26 = vmul.f32 %v128_v25, %v128_v25 }
 0x11a   :  { %v134_v27 = vsel %vm92_vm1, %v130_v26, 0.0 }
 0x11b   :  { %135 = vadd.xlane.f32.xlu1 %v134_v27 }
 0x186   :  { %v133_v29 = vpop.xlane.xlu1 %132 }
 0x187   :  { %v137_v31 = vmul.f32 %v133_v29, %v124_v17 }
 0x189   :  { %v139_v32 = vadd.f32 1e-05, %v137_v31 }
 0x18b   :  { %331 = vrsqrt.f32 %v139_v32  ;;  %vm147_vm4 = vweird.f32 %v139_v32 }
 0x18e   :  { %v136_v33 = vpop.xlane.xlu1 %135 }
 0x18f   :  { %v138_v34 = vmul.f32 %v136_v33, %v124_v17 }
 0x191   :  { %v332_v35 = vpop.eup %331  ;;  %v140_v36 = vadd.f32 1e-05, %v138_v34 }
 0x192   :  { %v142_v37 = vmul.f32 %v332_v35, %v139_v32  ;;  %vm148_vm3 = vweird.f32 %v332_v35 }
 0x193   :  { %333 = vrsqrt.f32 %v140_v36  ;;  %vm149_vm5 = vmor %vm147_vm4, %vm148_vm3  ;;  %vm157_vm7 = vweird.f32 %v140_v36 }
 0x194   :  { %v143_v38 = vmul.f32 %v332_v35, %v142_v37 }
 0x196   :  { %v144_v39 = vmul.f32 0.5, %v143_v38 }
 0x198   :  { %v145_v40 = vsub.f32 1.5, %v144_v39 }
 0x199   :  { %v334_v41 = vpop.eup %333 }
 0x19a   :  { %v146_v42 = vmul.f32 %v332_v35, %v145_v40  ;;  %v152_v43 = vmul.f32 %v334_v41, %v140_v36  ;;  %vm158_vm6 = vweird.f32 %v334_v41 }
 0x19b   :  { %vm159_vm8 = vmor %vm157_vm7, %vm158_vm6 }
 0x19c   :  { %v153_v44 = vmul.f32 %v334_v41, %v152_v43  ;;  %v150_v45 = vsel %vm149_vm5, %v332_v35, %v146_v42 }
 0x19d   :  { %v161_v48 = vmul.f32 %v150_v45, %v127_v20 }
 0x19e   :  { %v154_v46 = vmul.f32 0.5, %v153_v44 }
 0x19f   :  { %v167_v53 = vmul.f32 %v325_v49, %v161_v48 }
 0x1a0   :  { %v155_v47 = vsub.f32 1.5, %v154_v46 }
 0x1a1   :  { %v173_v56 = vadd.f32 %v326_v54, %v167_v53 }
 0x1a2   :  { %v156_v50 = vmul.f32 %v334_v41, %v155_v47 }
 0x1a4   :  { %v160_v51 = vsel %vm159_vm8, %v334_v41, %v156_v50 }
 0x1a5   :  { %v162_v52 = vmul.f32 %v160_v51, %v128_v25 }
 0x1a7   :  { %v168_v55 = vmul.f32 %v325_v49, %v162_v52 }
 0x1a9   :  { %v174_v57 = vadd.f32 %v326_v54, %v168_v55 }
 0x1ab   :  { %v175_v58 = vpack.c.bf16 %v174_v57, %v173_v56 }
 0x1ad   :  { %302 = vmatmul.msk.bf16.vlgmr.msra.gmra.mxu1 %vm92_vm1, %v175_v58 }
 0x22a   :  { %v208_v61 = vpop.f32.mrf.mxu1 }
 0x22b   :  { %v209_v63 = vadd.f32 %v327_v62, %v208_v61 }
 0x22d   :  { %v213_v2 = vmax.f32 %v209_v63, 0.0 }
 0x232   :  { %v210_v0 = vpop.f32.mrf.mxu1 }
 0x233   :  { %v211_v1 = vadd.f32 %v327_v62, %v210_v0 }
 0x235   :  { %v214_v3 = vmax.f32 %v211_v1, 0.0 }
 0x237   :  { %v215_v4 = vpack.c.bf16 %v214_v3, %v213_v2 }
 0x239   :  { %311 = vmatmul.msk.bf16.vlgmr.msra.gmra.mxu2 %vm92_vm1, %v215_v4 }
 0x2bc   :  { %v248_v6 = vpop.f32.mrf.mxu2 }
 0x2bd   :  { %v249_v7 = vadd.f32 %v328_v5, %v248_v6 }
 0x2bf   :  { %253 = vst.msk [vmem:[#allocation2] sm:$0xff] %vm92_vm1, %v249_v7 }
 0x2c4   :  { %v250_v8 = vpop.f32.mrf.mxu2 }
 0x2c5   :  { %v251_v9 = vadd.f32 %v328_v5, %v250_v8 }
 0x2c7   :  { %254 = vst.msk [vmem:[#allocation2 + $0x8] sm:$0xff] %vm92_vm1, %v251_v9 }
 0x2c8   :  { %267 = dma.vmem_to_hbm [thread:$0]  %s260_s26, 256, %s262_s28, [#allocation3], %s363_s29, %s363_s29, %s364_s30  }
 0x2c9   :  { %359 = dma.done.wait [#allocation3], 256  }
 0x2ca   :  { %360 = vsyncadd [#allocation3], 4294967040 }
 0x2cb   :  { %272 = vsyncpa [#allocation3], 1 }

// kernel: tpu_custom_call.1
= control target key start
LH: loop header
LB: loop body
LE: loop exit
PB: predicated region body
PF: predicated region fallthrough
CT: control target
= control target key end

     0   :  { %s462_s0 = inlined_call_operand.vmem [shape: bf16[16,64], index: 0, kind: input, shape index: {}]   ;;  %s463_s1 = inlined_call_operand.vmem [shape: bf16[64,32], index: 1, kind: input, shape index: {}]   ;;  %s464_s2 = inlined_call_operand.vmem [shape: f32[1,32], index: 2, kind: input, shape index: {}]   ;;  %s465_s3 = inlined_call_operand.vmem [shape: f32[1,32], index: 3, kind: input, shape index: {}]   ;;  %s466_s4 = inlined_call_operand.vmem [shape: bf16[32,32], index: 4, kind: input, shape index: {}]   ;;  %s467_s5 = inlined_call_operand.vmem [shape: f32[1,32], index: 5, kind: input, shape index: {}]   ;;  %s468_s6 = inlined_call_operand.vmem [shape: bf16[32,32], index: 6, kind: input, shape index: {}]   ;;  %s469_s7 = inlined_call_operand.vmem [shape: f32[1,32], index: 7, kind: input, shape index: {}]   ;;  %s470_s8 = inlined_call_operand.hbm [shape: f32[16,32], index: 8, kind: output, shape index: {}]  }
   0x1   :  { %v316_v0 = vld [vmem:[%s463_s1 + $0x18] sm:$0xff]  ;;  %v315_v1 = vld [vmem:[%s463_s1 + $0x10] sm:$0xff] }
   0x2   :  { %78 = vmatpush.bf16.msra.mxu0 %v316_v0 }
   0x3   :  { %13 = vsyncpa [#allocation3], 0  ;;  %v314_v2 = vld [vmem:[%s463_s1 + $0x8] sm:$0xff]  ;;  %v313_v3 = vld [vmem:[%s463_s1] sm:$0xff]  ;;  %vm70_vm0 = vcmask 523264   ;;  %vm92_vm1 = vcmask 261120  }
   0x4   :  { %v312_v4 = vld [vmem:[%s462_s0] sm:$0xff]  ;;  %v361_v11 = vmov 32.0   ;;  %v318_v28 = vld [vmem:[%s466_s4 + $0x8] sm:$0xff]  ;;  %s261_s28 = sshll.u32 %s470_s8, 4  ;;  %s363_s29 = smov 128   ;;  %s262_s28 = int_to_ptr.hbm [resolvable:$true] %s261_s28 }
   0x5   :  { %329 = vrcp.f32 %v361_v11  ;;  %205 = vmatpush.bf16.msra.mxu1 %v318_v28  ;;  %v317_v30 = vld [vmem:[%s466_s4] sm:$0xff]  ;;  %v320_v59 = vld [vmem:[%s468_s6 + $0x8] sm:$0xff]  ;;  %s364_s30 = smov 8  }
   0x6   :  { %79 = vmatpush.bf16.msra.mxu0 %v315_v1  ;;  %v325_v49 = vld [vmem:[%s464_s2] ss:$0 sm:$0xff]  ;;  %245 = vmatpush.bf16.msra.mxu2 %v320_v59 }
   0x7   :  { %v326_v54 = vld [vmem:[%s465_s3] ss:$0 sm:$0xff] }
   0x8   :  { %v319_v60 = vld [vmem:[%s468_s6] sm:$0xff]  ;;  %s362_s6 = smov [#allocation2]  }
   0x9   :  { %206 = vmatpush.bf16.msra.mxu1 %v317_v30  ;;  %v327_v62 = vld [vmem:[%s467_s5] ss:$0 sm:$0xff]  ;;  %s259_s26 = sshll.u32 %s362_s6, 4  ;;  %s260_s26 = int_to_ptr.vmem [resolvable:$true] %s259_s26 }
   0xa   :  { %80 = vmatpush.bf16.msra.mxu0 %v314_v2  ;;  %246 = vmatpush.bf16.msra.mxu2 %v319_v60 }
   0xb   :  { %v330_v12 = vpop.eup %329 }
   0xc   :  { %v119_v13 = vmul.f32 32.0, %v330_v12  ;;  %vm123_vm2 = vweird.f32 %v330_v12 }
   0xe   :  { %81 = vmatpush.bf16.msra.mxu0 %v313_v3  ;;  %v120_v14 = vsub.f32 1.0, %v119_v13 }
  0x10   :  { %v121_v15 = vmul.f32 %v330_v12, %v120_v14 }
  0x11   :  { %293 = vmatmul.msk.bf16.vlgmr.msra.gmra.mxu0 %vm70_vm0, %v312_v4 }
  0x12   :  { %v122_v16 = vadd.f32 %v330_v12, %v121_v15 }
  0x14   :  { %v124_v17 = vsel %vm123_vm2, %v330_v12, %v122_v16 }
  0x8e   :  { %v83_v5 = vpop.f32.mrf.mxu0 }
  0x8f   :  { %93 = vst.msk [vmem:[#allocation2] sm:$0xff] %vm92_vm1, %v83_v5  ;;  %v328_v5 = vld [vmem:[%s469_s7] ss:$0 sm:$0xff] }
  0x96   :  { %v85_v6 = vpop.f32.mrf.mxu0  ;;  %v109_v7 = vld [vmem:[#allocation2] sm:$0xff] }
  0x97   :  { %94 = vst.msk [vmem:[#allocation2 + $0x8] sm:$0xff] %vm92_vm1, %v85_v6  ;;  %v112_v8 = vsel %vm92_vm1, %v109_v7, 0.0 }
  0x98   :  { %113 = vadd.xlane.f32.xlu0 %v112_v8 }
  0x9e   :  { %v110_v9 = vld [vmem:[#allocation2 + $0x8] sm:$0xff] }
  0x9f   :  { %v115_v10 = vsel %vm92_vm1, %v110_v9, 0.0 }
  0xa0   :  { %116 = vadd.xlane.f32.xlu0 %v115_v10 }
 0x10b   :  { %v114_v18 = vpop.xlane.xlu0 %113 }
 0x10c   :  { %v125_v19 = vmul.f32 %v124_v17, %v114_v18 }
 0x10e   :  { %v127_v20 = vsub.f32 %v109_v7, %v125_v19 }
 0x110   :  { %v129_v21 = vmul.f32 %v127_v20, %v127_v20 }
 0x112   :  { %v131_v22 = vsel %vm92_vm1, %v129_v21, 0.0 }
 0x113   :  { %132 = vadd.xlane.f32.xlu1 %v131_v22  ;;  %v117_v23 = vpop.xlane.xlu0 %116 }
 0x114   :  { %v126_v24 = vmul.f32 %v124_v17, %v117_v23 }
 0x116   :  { %v128_v25 = vsub.f32 %v110_v9, %v126_v24 }
 0x118   :  { %v130_v26 = vmul.f32 %v128_v25, %v128_v25 }
 0x11a   :  { %v134_v27 = vsel %vm92_vm1, %v130_v26, 0.0 }
 0x11b   :  { %135 = vadd.xlane.f32.xlu1 %v134_v27 }
 0x186   :  { %v133_v29 = vpop.xlane.xlu1 %132 }
 0x187   :  { %v137_v31 = vmul.f32 %v133_v29, %v124_v17 }
 0x189   :  { %v139_v32 = vadd.f32 1e-05, %v137_v31 }
 0x18b   :  { %331 = vrsqrt.f32 %v139_v32  ;;  %vm147_vm4 = vweird.f32 %v139_v32 }
 0x18e   :  { %v136_v33 = vpop.xlane.xlu1 %135 }
 0x18f   :  { %v138_v34 = vmul.f32 %v136_v33, %v124_v17 }
 0x191   :  { %v332_v35 = vpop.eup %331  ;;  %v140_v36 = vadd.f32 1e-05, %v138_v34 }
 0x192   :  { %v142_v37 = vmul.f32 %v332_v35, %v139_v32  ;;  %vm148_vm3 = vweird.f32 %v332_v35 }
 0x193   :  { %333 = vrsqrt.f32 %v140_v36  ;;  %vm149_vm5 = vmor %vm147_vm4, %vm148_vm3  ;;  %vm157_vm7 = vweird.f32 %v140_v36 }
 0x194   :  { %v143_v38 = vmul.f32 %v332_v35, %v142_v37 }
 0x196   :  { %v144_v39 = vmul.f32 0.5, %v143_v38 }
 0x198   :  { %v145_v40 = vsub.f32 1.5, %v144_v39 }
 0x199   :  { %v334_v41 = vpop.eup %333 }
 0x19a   :  { %v146_v42 = vmul.f32 %v332_v35, %v145_v40  ;;  %v152_v43 = vmul.f32 %v334_v41, %v140_v36  ;;  %vm158_vm6 = vweird.f32 %v334_v41 }
 0x19b   :  { %vm159_vm8 = vmor %vm157_vm7, %vm158_vm6 }
 0x19c   :  { %v153_v44 = vmul.f32 %v334_v41, %v152_v43  ;;  %v150_v45 = vsel %vm149_vm5, %v332_v35, %v146_v42 }
 0x19d   :  { %v161_v48 = vmul.f32 %v150_v45, %v127_v20 }
 0x19e   :  { %v154_v46 = vmul.f32 0.5, %v153_v44 }
 0x19f   :  { %v167_v53 = vmul.f32 %v325_v49, %v161_v48 }
 0x1a0   :  { %v155_v47 = vsub.f32 1.5, %v154_v46 }
 0x1a1   :  { %v173_v56 = vadd.f32 %v326_v54, %v167_v53 }
 0x1a2   :  { %v156_v50 = vmul.f32 %v334_v41, %v155_v47 }
 0x1a4   :  { %v160_v51 = vsel %vm159_vm8, %v334_v41, %v156_v50 }
 0x1a5   :  { %v162_v52 = vmul.f32 %v160_v51, %v128_v25 }
 0x1a7   :  { %v168_v55 = vmul.f32 %v325_v49, %v162_v52 }
 0x1a9   :  { %v174_v57 = vadd.f32 %v326_v54, %v168_v55 }
 0x1ab   :  { %v175_v58 = vpack.c.bf16 %v174_v57, %v173_v56 }
 0x1ad   :  { %302 = vmatmul.msk.bf16.vlgmr.msra.gmra.mxu1 %vm92_vm1, %v175_v58 }
 0x22a   :  { %v208_v61 = vpop.f32.mrf.mxu1 }
 0x22b   :  { %v209_v63 = vadd.f32 %v327_v62, %v208_v61 }
 0x22d   :  { %v213_v2 = vmax.f32 %v209_v63, 0.0 }
 0x232   :  { %v210_v0 = vpop.f32.mrf.mxu1 }
 0x233   :  { %v211_v1 = vadd.f32 %v327_v62, %v210_v0 }
 0x235   :  { %v214_v3 = vmax.f32 %v211_v1, 0.0 }
 0x237   :  { %v215_v4 = vpack.c.bf16 %v214_v3, %v213_v2 }
 0x239   :  { %311 = vmatmul.msk.bf16.vlgmr.msra.gmra.mxu2 %vm92_vm1, %v215_v4 }
 0x2bc   :  { %v248_v6 = vpop.f32.mrf.mxu2 }
 0x2bd   :  { %v249_v7 = vadd.f32 %v328_v5, %v248_v6 }
 0x2bf   :  { %253 = vst.msk [vmem:[#allocation2] sm:$0xff] %vm92_vm1, %v249_v7 }
 0x2c4   :  { %v250_v8 = vpop.f32.mrf.mxu2 }
 0x2c5   :  { %v251_v9 = vadd.f32 %v328_v5, %v250_v8 }
 0x2c7   :  { %254 = vst.msk [vmem:[#allocation2 + $0x8] sm:$0xff] %vm92_vm1, %v251_v9 }
 0x2c8   :  { %267 = dma.vmem_to_hbm [thread:$0]  %s260_s26, 256, %s262_s28, [#allocation3], %s363_s29, %s363_s29, %s364_s30  }
 0x2c9   :  { %359 = dma.done.wait [#allocation3], 256  }
 0x2ca   :  { %360 = vsyncadd [#allocation3], 4294967040 }
 0x2cb   :  { %272 = vsyncpa [#allocation3], 1 }

</bundles_post_ra>
